<compile_context>
chip_gen: v7x
topology: tpu7x:2x2x1
jax: 0.10.0
libtpu: 0.0.40
codegen_flags: <defaults>
</compile_context>

<pallas_src>
import functools

import jax
import jax.numpy as jnp
from jax.experimental import pallas as pl
from jax.experimental.pallas import tpu as pltpu


def _pinn_mlp_kernel(n_hidden_layers,
                     xT_ref, w0_ref, b0_ref, wh_ref, bh_ref, we_ref, be_ref,
                     oT_ref):
    """One batch tile of the full PINN MLP forward (batch on the lane axis).

    xT_ref : (n_input,  Bt)                   VMEM (pipelined per grid step)
    w0_ref : (n_hidden, n_input)              VMEM (resident)
    b0_ref : (n_hidden, 1)                    VMEM (resident)
    wh_ref : (max(L-1,1), n_hidden, n_hidden) VMEM (resident)
    bh_ref : (max(L-1,1), n_hidden, 1)        VMEM (resident)
    we_ref : (n_output, n_hidden)             VMEM (resident)
    be_ref : (n_output, 1)                    VMEM (resident)
    oT_ref : (n_output, Bt)                   VMEM (pipelined per grid step)
    """
    # Activations / tanh run in the staging dtype (f32 default, bf16 optional);
    # all matmuls accumulate in f32 on the MXU.
    act_dtype = xT_ref.dtype

    # Input layer: Linear + Tanh   (W0 @ x + b0) -> (n_hidden, Bt).
    h = jnp.tanh(
        (jnp.dot(w0_ref[...], xT_ref[...], preferred_element_type=jnp.float32)
         + b0_ref[...]).astype(act_dtype))

    # Hidden layers: (Linear + Tanh) x (n_layers - 1).  Static unroll is fine
    # at typical PINN depths (<= ~8); switch to lax.fori_loop if depth grows.
    for i in range(n_hidden_layers):
        h = jnp.tanh(
            (jnp.dot(wh_ref[i], h, preferred_element_type=jnp.float32)
             + bh_ref[i]).astype(act_dtype))

    # Output layer: Linear (no activation) -> (n_output, Bt), lane-dense store.
    oT_ref[...] = (
        jnp.dot(we_ref[...], h, preferred_element_type=jnp.float32)
        + be_ref[...]
    ).astype(oT_ref.dtype)


def _round_up(a, m):
    return (a + m - 1) // m * m


def _vmem_bytes_estimate(n_input, n_output, n_hidden, n_stacked, bt):
    """Generous f32 footprint estimate for the scoped-VMEM limit."""
    r8 = lambda n: _round_up(n, 8)
    r128 = lambda n: _round_up(n, 128)
    io_tiles = 2 * (r8(n_input) + r8(n_output)) * bt * 4        # double-buffered x/o
    acts = 6 * r8(n_hidden) * bt * 4                             # live tanh temporaries
    weights = 4 * (r8(n_hidden) * r128(n_input)
                   + n_stacked * r8(n_hidden) * r128(n_hidden)
                   + r8(n_output) * r128(n_hidden)
                   + (n_stacked + 2) * r8(n_hidden) * r128(1))
    return io_tiles + acts + weights


def pinn_forward_t(xT, params, *, batch_tile=8192, compute_dtype=None):
    """xT: (n_input, B) -> (n_output, B).  Preferred (lane-major) entry point.

    No pad+transpose pass: callers that generate collocation points in
    (n_input, B) layout feed the kernel directly (padding only if B is not a
    multiple of the batch tile).
    """
    w0, b0, wh, bh, we, be = params
    n_input, B = xT.shape
    n_hidden = w0.shape[0]
    n_output = we.shape[0]
    n_hidden_layers = wh.shape[0]
    out_dtype = xT.dtype

    # Mosaic dislikes zero-sized refs: if there are no hidden layers, pass a
    # single dummy layer that the (empty) unrolled loop never reads.
    if n_hidden_layers == 0:
        wh = jnp.zeros((1, n_hidden, n_hidden), w0.dtype)
        bh = jnp.zeros((1, n_hidden, 1), w0.dtype)

    # Optional bf16 staging for the EUP-bound tanh chain (v6e/v7x only;
    # matmuls still accumulate in f32, final store back in out_dtype).
    if compute_dtype is not None and compute_dtype != xT.dtype:
        xT = xT.astype(compute_dtype)
        w0, b0, wh, bh, we, be = (t.astype(compute_dtype)
                                  for t in (w0, b0, wh, bh, we, be))

    # Batch tile: multiple of 128 lanes, capped by `batch_tile`.
    bt = min(_round_up(batch_tile, 128), _round_up(B, 128))
    Bp = _round_up(B, bt)
    # Keep >=2 grid steps whenever possible so the "parallel" batch axis can
    # use both TensorCores on v7x (one extra tiny step on v5e/v6e is noise).
    if Bp // bt < 2 and Bp > 128:
        bt = _round_up(pl.cdiv(Bp, 2), 128)
        Bp = _round_up(B, bt)
    grid = (Bp // bt,)

    if Bp != B:  # lane-axis pad only when needed (cheap, no transpose pass)
        xT = jnp.pad(xT, ((0, 0), (0, Bp - B)))

    n_stacked = max(n_hidden_layers, 1)
    est = _vmem_bytes_estimate(n_input, n_output, n_hidden, n_stacked, bt)
    vmem_limit = int(min(max(2 * est + (4 << 20), 16 << 20), 48 << 20))

    kernel = functools.partial(_pinn_mlp_kernel, n_hidden_layers)

    resident2 = lambda i: (0, 0)        # weights/biases stay put across the grid
    resident3 = lambda i: (0, 0, 0)

    oT = pl.pallas_call(
        kernel,
        out_shape=jax.ShapeDtypeStruct((n_output, Bp), out_dtype),
        grid=grid,
        in_specs=[
            pl.BlockSpec((n_input, bt), lambda i: (0, i)),        # xT tile
            pl.BlockSpec(w0.shape, resident2),                    # w0
            pl.BlockSpec(b0.shape, resident2),                    # b0
            pl.BlockSpec(wh.shape, resident3),                    # wh (stacked)
            pl.BlockSpec(bh.shape, resident3),                    # bh (stacked)
            pl.BlockSpec(we.shape, resident2),                    # we
            pl.BlockSpec(be.shape, resident2),                    # be
        ],
        out_specs=pl.BlockSpec((n_output, bt), lambda i: (0, i)),
        compiler_params=pltpu.CompilerParams(
            dimension_semantics=("parallel",),   # shard batch tiles on v7x's 2 TCs
            vmem_limit_bytes=vmem_limit,         # sized to the real footprint
        ),
    )(xT, w0, b0, wh, bh, we, be)

    return oT[:, :B]


def pinn_forward(x, params, *, batch_tile=8192, compute_dtype=None,
                 small_batch_threshold=1024):
    """x: (B, n_input) -> (B, n_output).  PyTorch-module-compatible API."""
    B = x.shape[0]
    # Small-batch fast path: plain XLA fusion beats kernel launch + 128-lane
    # padding for tiny collocation sets.
    if B < small_batch_threshold:
        return pinn_reference(x, params).astype(x.dtype)
    oT = pinn_forward_t(x.T, params, batch_tile=batch_tile,
                        compute_dtype=compute_dtype)
    return oT.T  # (n_output, B) -> (B, n_output); cheap for tiny n_output


def init_params(key, n_input, n_output, n_hidden, n_layers, dtype=jnp.float32):
    """Synthetic params in PyTorch nn.Linear layout: W (out, in), b (out, 1)."""
    n_hidden_layers = max(n_layers - 1, 0)
    ks = jax.random.split(key, 6)
    w0 = jax.random.normal(ks[0], (n_hidden, n_input), dtype) * 0.5
    b0 = jax.random.normal(ks[1], (n_hidden, 1), dtype) * 0.1
    wh = jax.random.normal(ks[2], (n_hidden_layers, n_hidden, n_hidden), dtype) * 0.2
    bh = jax.random.normal(ks[3], (n_hidden_layers, n_hidden, 1), dtype) * 0.1
    we = jax.random.normal(ks[4], (n_output, n_hidden), dtype) * 0.5
    be = jax.random.normal(ks[5], (n_output, 1), dtype) * 0.1
    return (w0, b0, wh, bh, we, be)


def pinn_reference(x, params):
    """Pure-JAX reference (matches the PyTorch module's forward)."""
    w0, b0, wh, bh, we, be = params
    h = jnp.tanh(x @ w0.T + b0[:, 0])
    for i in range(wh.shape[0]):
        h = jnp.tanh(h @ wh[i].T + bh[i, :, 0])
    return h @ we.T + be[:, 0]


if __name__ == "__main__":
    # Small shapes consistent with the module (a typical tiny PINN).
    n_input, n_output, n_hidden, n_layers = 2, 1, 32, 3

    key = jax.random.PRNGKey(0)
    k_x1, k_x2, k_p = jax.random.split(key, 3)
    params = init_params(k_p, n_input, n_output, n_hidden, n_layers)

    # 1) Tiny batch, forced through the Pallas path (exercise the kernel).
    x_small = jax.random.normal(k_x1, (8, n_input), jnp.float32)
    out_small = jax.block_until_ready(
        pinn_forward(x_small, params, small_batch_threshold=0))
    ref_small = pinn_reference(x_small, params)
    assert out_small.shape == (8, n_output), out_small.shape
    assert jnp.allclose(out_small, ref_small, atol=1e-4, rtol=1e-4)

    # 2) Larger batch through the default path: multi-tile "parallel" grid.
    x_big = jax.random.normal(k_x2, (2048, n_input), jnp.float32)
    out_big = jax.block_until_ready(pinn_forward(x_big, params))
    ref_big = pinn_reference(x_big, params)
    assert out_big.shape == (2048, n_output), out_big.shape
    assert jnp.allclose(out_big, ref_big, atol=1e-4, rtol=1e-4)

    print("KERNEL_OK")
</pallas_src>

<mosaic_0001>
module attributes {stable_mosaic.version = 11 : i64} {
  func.func @_pinn_mlp_kernel(%arg0: i32, %arg1: memref<2x128xf32, #tpu.memory_space<vmem>>, %arg2: memref<32x2xf32, #tpu.memory_space<vmem>>, %arg3: memref<32x1xf32, #tpu.memory_space<vmem>>, %arg4: memref<2x32x32xf32, #tpu.memory_space<vmem>>, %arg5: memref<2x32x1xf32, #tpu.memory_space<vmem>>, %arg6: memref<1x32xf32, #tpu.memory_space<vmem>>, %arg7: memref<1x1xf32, #tpu.memory_space<vmem>>, %arg8: memref<1x128xf32, #tpu.memory_space<vmem>>) attributes {dimension_semantics = [#tpu.dimension_semantics<parallel>], iteration_bounds = array<i64: 1>, scalar_prefetch = 0 : i64, scratch_operands = 0 : i64, tpu.core_type = #tpu.core_type<tc>, window_params = [{transform_indices = @transform_0, window_bounds = array<i64: 2, 128>}, {pipeline_mode = #tpu.pipeline_mode<synchronous>, transform_indices = @transform_1, window_bounds = array<i64: 32, 2>}, {pipeline_mode = #tpu.pipeline_mode<synchronous>, transform_indices = @transform_2, window_bounds = array<i64: 32, 1>}, {pipeline_mode = #tpu.pipeline_mode<synchronous>, transform_indices = @transform_3, window_bounds = array<i64: 2, 32, 32>}, {pipeline_mode = #tpu.pipeline_mode<synchronous>, transform_indices = @transform_4, window_bounds = array<i64: 2, 32, 1>}, {pipeline_mode = #tpu.pipeline_mode<synchronous>, transform_indices = @transform_5, window_bounds = array<i64: 1, 32>}, {pipeline_mode = #tpu.pipeline_mode<synchronous>, transform_indices = @transform_6, window_bounds = array<i64: 1, 1>}, {transform_indices = @transform_7, window_bounds = array<i64: 1, 128>}]} {
    %c0 = arith.constant 0 : index
    %c0_0 = arith.constant 0 : index
    %0 = vector.load %arg2[%c0, %c0_0] : memref<32x2xf32, #tpu.memory_space<vmem>>, vector<32x2xf32>
    %c0_1 = arith.constant 0 : index
    %c0_2 = arith.constant 0 : index
    %1 = vector.load %arg1[%c0_1, %c0_2] : memref<2x128xf32, #tpu.memory_space<vmem>>, vector<2x128xf32>
    %cst = arith.constant dense<0.000000e+00> : vector<32x128xf32>
    %2 = tpu.matmul %0, %1, %cst {dimension_numbers = #tpu.dot_dimension_numbers<[1], [0], [0], [1], [0, 0, 1, 1], [], []>} : vector<32x2xf32>, vector<2x128xf32>, vector<32x128xf32> -> vector<32x128xf32>
    %c0_3 = arith.constant 0 : index
    %c0_4 = arith.constant 0 : index
    %3 = vector.load %arg3[%c0_3, %c0_4] : memref<32x1xf32, #tpu.memory_space<vmem>>, vector<32x1xf32>
    %4 = vector.broadcast %3 : vector<32x1xf32> to vector<32x128xf32>
    %5 = arith.addf %2, %4 : vector<32x128xf32>
    %6 = math.tanh %5 : vector<32x128xf32>
    %c0_5 = arith.constant 0 : index
    %c0_6 = arith.constant 0 : index
    %c0_7 = arith.constant 0 : index
    %7 = vector.load %arg4[%c0_5, %c0_6, %c0_7] : memref<2x32x32xf32, #tpu.memory_space<vmem>>, vector<1x32x32xf32>
    %8 = vector.shape_cast %7 : vector<1x32x32xf32> to vector<32x32xf32>
    %cst_8 = arith.constant dense<0.000000e+00> : vector<32x128xf32>
    %9 = tpu.matmul %8, %6, %cst_8 {dimension_numbers = #tpu.dot_dimension_numbers<[1], [0], [0], [1], [0, 0, 1, 1], [], []>} : vector<32x32xf32>, vector<32x128xf32>, vector<32x128xf32> -> vector<32x128xf32>
    %c0_9 = arith.constant 0 : index
    %c0_10 = arith.constant 0 : index
    %c0_11 = arith.constant 0 : index
    %10 = vector.load %arg5[%c0_9, %c0_10, %c0_11] : memref<2x32x1xf32, #tpu.memory_space<vmem>>, vector<1x32x1xf32>
    %11 = vector.shape_cast %10 : vector<1x32x1xf32> to vector<32x1xf32>
    %12 = vector.broadcast %11 : vector<32x1xf32> to vector<32x128xf32>
    %13 = arith.addf %9, %12 : vector<32x128xf32>
    %14 = math.tanh %13 : vector<32x128xf32>
    %c1 = arith.constant 1 : index
    %c0_12 = arith.constant 0 : index
    %c0_13 = arith.constant 0 : index
    %15 = vector.load %arg4[%c1, %c0_12, %c0_13] : memref<2x32x32xf32, #tpu.memory_space<vmem>>, vector<1x32x32xf32>
    %16 = vector.shape_cast %15 : vector<1x32x32xf32> to vector<32x32xf32>
    %cst_14 = arith.constant dense<0.000000e+00> : vector<32x128xf32>
    %17 = tpu.matmul %16, %14, %cst_14 {dimension_numbers = #tpu.dot_dimension_numbers<[1], [0], [0], [1], [0, 0, 1, 1], [], []>} : vector<32x32xf32>, vector<32x128xf32>, vector<32x128xf32> -> vector<32x128xf32>
    %c1_15 = arith.constant 1 : index
    %c0_16 = arith.constant 0 : index
    %c0_17 = arith.constant 0 : index
    %18 = vector.load %arg5[%c1_15, %c0_16, %c0_17] : memref<2x32x1xf32, #tpu.memory_space<vmem>>, vector<1x32x1xf32>
    %19 = vector.shape_cast %18 : vector<1x32x1xf32> to vector<32x1xf32>
    %20 = vector.broadcast %19 : vector<32x1xf32> to vector<32x128xf32>
    %21 = arith.addf %17, %20 : vector<32x128xf32>
    %22 = math.tanh %21 : vector<32x128xf32>
    %c0_18 = arith.constant 0 : index
    %c0_19 = arith.constant 0 : index
    %23 = vector.load %arg6[%c0_18, %c0_19] : memref<1x32xf32, #tpu.memory_space<vmem>>, vector<1x32xf32>
    %cst_20 = arith.constant dense<0.000000e+00> : vector<1x128xf32>
    %24 = tpu.matmul %23, %22, %cst_20 {dimension_numbers = #tpu.dot_dimension_numbers<[1], [0], [0], [1], [0, 0, 1, 1], [], []>} : vector<1x32xf32>, vector<32x128xf32>, vector<1x128xf32> -> vector<1x128xf32>
    %c0_21 = arith.constant 0 : index
    %c0_22 = arith.constant 0 : index
    %25 = vector.load %arg7[%c0_21, %c0_22] : memref<1x1xf32, #tpu.memory_space<vmem>>, vector<1x1xf32>
    %26 = vector.broadcast %25 : vector<1x1xf32> to vector<1x128xf32>
    %27 = arith.addf %24, %26 : vector<1x128xf32>
    %c0_23 = arith.constant 0 : index
    %c0_24 = arith.constant 0 : index
    %28 = vector.load %arg8[%c0_23, %c0_24] : memref<1x128xf32, #tpu.memory_space<vmem>>, vector<1x128xf32>
    tpu.vector_store %arg8[%c0_23, %c0_24], %27 {strides = array<i32>} : memref<1x128xf32, #tpu.memory_space<vmem>>, vector<1x128xf32>,
    return
  }
  func.func @transform_0(%arg0: i32) -> (i32, i32) {
    %c0_i32 = arith.constant 0 : i32
    %c0_i32_0 = arith.constant 0 : i32
    return %c0_i32, %arg0 : i32, i32
  }
  func.func @transform_1(%arg0: i32) -> (i32, i32) {
    %c0_i32 = arith.constant 0 : i32
    %c0_i32_0 = arith.constant 0 : i32
    %c0_i32_1 = arith.constant 0 : i32
    return %c0_i32, %c0_i32_0 : i32, i32
  }
  func.func @transform_2(%arg0: i32) -> (i32, i32) {
    %c0_i32 = arith.constant 0 : i32
    %c0_i32_0 = arith.constant 0 : i32
    %c0_i32_1 = arith.constant 0 : i32
    return %c0_i32, %c0_i32_0 : i32, i32
  }
  func.func @transform_3(%arg0: i32) -> (i32, i32, i32) {
    %c0_i32 = arith.constant 0 : i32
    %c0_i32_0 = arith.constant 0 : i32
    %c0_i32_1 = arith.constant 0 : i32
    %c0_i32_2 = arith.constant 0 : i32
    return %c0_i32, %c0_i32_0, %c0_i32_1 : i32, i32, i32
  }
  func.func @transform_4(%arg0: i32) -> (i32, i32, i32) {
    %c0_i32 = arith.constant 0 : i32
    %c0_i32_0 = arith.constant 0 : i32
    %c0_i32_1 = arith.constant 0 : i32
    %c0_i32_2 = arith.constant 0 : i32
    return %c0_i32, %c0_i32_0, %c0_i32_1 : i32, i32, i32
  }
  func.func @transform_5(%arg0: i32) -> (i32, i32) {
    %c0_i32 = arith.constant 0 : i32
    %c0_i32_0 = arith.constant 0 : i32
    %c0_i32_1 = arith.constant 0 : i32
    return %c0_i32, %c0_i32_0 : i32, i32
  }
  func.func @transform_6(%arg0: i32) -> (i32, i32) {
    %c0_i32 = arith.constant 0 : i32
    %c0_i32_0 = arith.constant 0 : i32
    %c0_i32_1 = arith.constant 0 : i32
    return %c0_i32, %c0_i32_0 : i32, i32
  }
  func.func @transform_7(%arg0: i32) -> (i32, i32) {
    %c0_i32 = arith.constant 0 : i32
    %c0_i32_0 = arith.constant 0 : i32
    return %c0_i32, %arg0 : i32, i32
  }
}

</mosaic_0001>

<bundles_post_ra>
// kernel: tpu_custom_call.1
= control target key start
LH: loop header
LB: loop body
LE: loop exit
PB: predicated region body
PF: predicated region fallthrough
CT: control target
= control target key end

     0   :  { %s847_s0 = inlined_call_operand.vmem [shape: f32[2,128], index: 0, kind: input, shape index: {}]   ;;  %s848_s1 = inlined_call_operand.vmem [shape: f32[32,2], index: 1, kind: input, shape index: {}]   ;;  %s849_s2 = inlined_call_operand.vmem [shape: f32[32,1], index: 2, kind: input, shape index: {}]   ;;  %s850_s3 = inlined_call_operand.vmem [shape: f32[2,32,32], index: 3, kind: input, shape index: {}]   ;;  %s851_s4 = inlined_call_operand.vmem [shape: f32[2,32,1], index: 4, kind: input, shape index: {}]   ;;  %s852_s5 = inlined_call_operand.vmem [shape: f32[1,32], index: 5, kind: input, shape index: {}]   ;;  %s853_s6 = inlined_call_operand.<no memory space> [shape: f32[1,1], index: 6, kind: input, shape index: {}]   ;;  %s854_s7 = inlined_call_operand.hbm [shape: f32[1,128], index: 7, kind: output, shape index: {}]  }
   0x1   :  { %v12_v0 = vstv %s853_s6 }
   0x2   :  { %13 = vst [vmem:[#allocation2] sm:$0x1] %v12_v0 }
   0x3   :  { %v33_v1 = vld [vmem:[%s847_s0] sm:$0x3]  ;;  %vm71_vm0 = vcmask 1041408   ;;  %vm58_vm1 = vcmask 15360   ;;  %v30_v3 = vld [vmem:[%s848_s1 + $0x8] sm:$0xff]  ;;  %v31_v4 = vld [vmem:[%s848_s1 + $0x10] sm:$0xff] }
   0x4   :  { %v29_v2 = vld [vmem:[%s848_s1] sm:$0xff]  ;;  %572 = vmatprep.subr.msk.mxu0 %vm71_vm0, %v33_v1  ;;  %v696_v6 = vmov 0   ;;  %v36_v7 = vld [vmem:[%s849_s2 + $0x10] sm:$0xff]  ;;  %v32_v8 = vld [vmem:[%s848_s1 + $0x18] sm:$0xff] }
   0x5   :  { %574 = vmatprep.mubr.msk.f32.mxu0 %vm58_vm1, %v29_v2  ;;  %v34_v5 = vld [vmem:[%s849_s2] sm:$0xff]  ;;  %573 = vmatpush3.msk.msra.mxu0 %vm71_vm0, %v33_v1  ;;  %v35_v9 = vld [vmem:[%s849_s2 + $0x8] sm:$0xff]  ;;  %v37_v10 = vld [vmem:[%s849_s2 + $0x18] sm:$0xff] }
   0x6   :  { %646 = vset.pattern.permute.xlu0 %v696_v6  ;;  %575 = vmatmul.mubr.msk.f32.vlgmr.msra.gmra.mrb[0].mxu0 %vm58_vm1, %v30_v3 }
   0x7   :  { %40 = vperm.xlu0 %646, %v34_v5   ;;  %577 = vmatprep.mubr.msk.f32.mxu0 %vm58_vm1, %v31_v4 }
   0x8   :  { %647 = vset.pattern.permute.xlu1 %v696_v6 }
   0x9   :  { %50 = vperm.xlu1 %647, %v36_v7  }
   0xa   :  { %14 = vsyncpa [#allocation4], 0  ;;  %578 = vmatmul.mubr.msk.f32.gmra.mrb[2].mxu0 %vm58_vm1, %v32_v8  ;;  %v168_v11 = vld [vmem:[%s851_s4] sm:$0xff]  ;;  %v169_v12 = vld [vmem:[%s851_s4 + $0x8] sm:$0xff]  ;;  %vm192_vm2 = vcmask 261120   ;;  %v697_v0 = vmov 0.0|0.0  }
   0xb   :  { %45 = vperm.xlu0 %646, %v35_v9   ;;  %v170_v13 = vld [vmem:[%s851_s4 + $0x10] sm:$0xff]  ;;  %v171_v14 = vld [vmem:[%s851_s4 + $0x18] sm:$0xff]  ;;  %v537_v15 = vld [vmem:[%s851_s4 + $0x20] sm:$0xff]  ;;  %vm698_vm3 = vmmov 0   ;;  %v699_v1 = vmov 0.0   ;;  %s700_s23 = smov [#allocation3]  }
   0xc   :  { %v538_v16 = vld [vmem:[%s851_s4 + $0x28] sm:$0xff]  ;;  %v539_v17 = vld [vmem:[%s851_s4 + $0x30] sm:$0xff]  ;;  %v540_v18 = vld [vmem:[%s851_s4 + $0x38] sm:$0xff]  ;;  %s516_s2 = sshll.u32 %s700_s23, 4  ;;  %s517_s2 = int_to_ptr.vmem [resolvable:$true] %s516_s2 }
   0xd   :  { %55 = vperm.xlu1 %647, %v37_v10   ;;  %v426_v19 = vld [vmem:[#allocation2] sm:$0x1]  ;;  %v165_v39 = vld [vmem:[%s850_s3 + $0x8] sm:$0xff]  ;;  %v166_v40 = vld [vmem:[%s850_s3 + $0x10] sm:$0xff]  ;;  %s672_s24 = scalar_lea.vmem %s517_s2, 16  ;;  %s676_s25 = scalar_lea.vmem %s517_s2, 32 }
   0xe   :  { %v164_v20 = vld [vmem:[%s850_s3] sm:$0xff]  ;;  %v167_v41 = vld [vmem:[%s850_s3 + $0x18] sm:$0xff]  ;;  %v534_v61 = vld [vmem:[%s850_s3 + $0x28] sm:$0xff]  ;;  %p673_p0 = scmp.ne.s32.totalorder %s517_s2, %s672_s24  ;;  %p677_p1 = scmp.lt.s32.totalorder %s517_s2, %s517_s2 }
   0xf   :  { %174 = vperm.xlu0 %646, %v168_v11   ;;  %588 = vmatprep.mubr.msk.f32.mxu1 %vm192_vm2, %v164_v20  ;;  %v533_v42 = vld [vmem:[%s850_s3 + $0x20] sm:$0xff]  ;;  %v535_v62 = vld [vmem:[%s850_s3 + $0x30] sm:$0xff]  ;;  %v536_v63 = vld [vmem:[%s850_s3 + $0x38] sm:$0xff]  ;;  %p678_p2 = scmp.lt.s32.totalorder %s676_s25, %s672_s24 }
  0x10   :  { %602 = vmatprep.mubr.msk.f32.mxu0 %vm192_vm2, %v533_v42  ;;  %v425_v20 = vld [vmem:[%s852_s5] sm:$0x1] }
  0x11   :  { %179 = vperm.xlu1 %647, %v169_v12   ;;  %p679_p3 = por %p678_p2, %p677_p1 }
  0x13   :  { %184 = vperm.xlu0 %646, %v170_v13   ;;  %p680_p4 = pnand %p679_p3, %p673_p0 }
  0x15   :  { %189 = vperm.xlu1 %647, %v171_v14  }
  0x17   :  { %306 = vperm.xlu0 %646, %v537_v15  }
  0x19   :  { %311 = vperm.xlu1 %647, %v538_v16  }
  0x1b   :  { %316 = vperm.xlu0 %646, %v539_v17  }
  0x1d   :  { %321 = vperm.xlu1 %647, %v540_v18  }
  0x1f   :  { %429 = vperm.xlu0 %646, %v426_v19  }
  0x86   :  { %v41_v21 = vpop.permute.xlu0 %40 }
  0x88   :  { %v51_v22 = vpop.permute.xlu1 %50 }
  0x8a   :  { %v46_v23 = vpop.permute.xlu0 %45 }
  0x8c   :  { %v56_v28 = vpop.permute.xlu1 %55 }
  0x8e   :  { %v175_v44 = vpop.permute.xlu0 %174 }
  0x90   :  { %v180_v43 = vpop.permute.xlu1 %179 }
  0x92   :  { %v185_v51 = vpop.permute.xlu0 %184 }
  0x94   :  { %v190_v49 = vpop.permute.xlu1 %189 }
  0x96   :  { %v307_v3 = vpop.permute.xlu0 %306 }
  0x98   :  { %v312_v2 = vpop.permute.xlu1 %311 }
  0x9a   :  { %v317_v10 = vpop.permute.xlu0 %316 }
  0x9c   :  { %v322_v8 = vpop.permute.xlu1 %321 }
  0xd9   :  { %v576_v24 = vpop.f32.mrb[0].mxu0 }
  0xda   :  { %v147_v25 = vadd.f32 %v576_v24, %v46_v23  ;;  %v141_v26 = vpop.f32.mrb[1].mxu0  ;;  %v430_v24 = vpop.permute.xlu0 %429 }
  0xdb   :  { %v142_v27 = vadd.f32 %v141_v26, %v41_v21  ;;  %v432_v21 = vlaneseq }
  0xdc   :  { %648 = vtanh.f32 %v147_v25 }
  0xdd   :  { %650 = vtanh.f32 %v142_v27  ;;  %v579_v29 = vpop.f32.mrb[2].mxu0 }
  0xde   :  { %v157_v30 = vadd.f32 %v579_v29, %v56_v28  ;;  %v151_v31 = vpop.f32.mrb[3].mxu0 }
  0xdf   :  { %v152_v32 = vadd.f32 %v151_v31, %v51_v22  ;;  %v433_v22 = vshrl.u32 %v432_v21, 7 }
  0xe0   :  { %652 = vtanh.f32 %v157_v30 }
  0xe1   :  { %654 = vtanh.f32 %v152_v32  ;;  %v434_v23 = vsub.s32 0, %v433_v22 }
  0xe3   :  { %v435_v25 = vrot.slane %v430_v24, %v434_v23 }
  0xe6   :  { %v649_v33 = vpop.eup %648 }
  0xe7   :  { %v651_v34 = vpop.eup %650 }
  0xe8   :  { %v619_v35 = vpack.c.bf16 %v649_v33, %v651_v34 }
  0xea   :  { %v653_v36 = vpop.eup %652  ;;  %620 = vmatprep.subr.bf16.mxu1 %v619_v35 }
  0xeb   :  { %v655_v37 = vpop.eup %654  ;;  %622 = vmatpush3.bf16.msra.mxu1 %v619_v35 }
  0xec   :  { %v623_v38 = vpack.c.bf16 %v653_v36, %v655_v37 }
  0xee   :  { %624 = vmatprep.subr.bf16.mxu1 %v623_v38 }
  0xef   :  { %626 = vmatpush3.bf16.msra.mxu1 %v623_v38 }
  0xf0   :  { %635 = vmatprep.subr.bf16.mxu1 %v697_v0 }
  0xf2   :  { %589 = vmatmul.mubr.msk.f32.vlgmr.msra.gmra.mrb[0].mxu1 %vm192_vm2, %v165_v39 }
  0xf3   :  { %591 = vmatprep.mubr.msk.f32.mxu1 %vm192_vm2, %v166_v40 }
  0xf6   :  { %592 = vmatmul.mubr.msk.f32.gmra.mrb[2].mxu1 %vm192_vm2, %v167_v41 }
  0xf7   :  { %616 = vmatprep.mubr.msk.f32.mxu1 %vm698_vm3, %v699_v1 }
 0x1c5   :  { %v590_v45 = vpop.f32.mrb[0].mxu1 }
 0x1c6   :  { %v277_v46 = vadd.f32 %v590_v45, %v180_v43  ;;  %v271_v47 = vpop.f32.mrb[1].mxu1 }
 0x1c7   :  { %v272_v48 = vadd.f32 %v271_v47, %v175_v44 }
 0x1c8   :  { %656 = vtanh.f32 %v277_v46 }
 0x1c9   :  { %658 = vtanh.f32 %v272_v48  ;;  %v593_v50 = vpop.f32.mrb[2].mxu1 }
 0x1ca   :  { %v287_v52 = vadd.f32 %v593_v50, %v190_v49  ;;  %v281_v53 = vpop.f32.mrb[3].mxu1 }
 0x1cb   :  { %v282_v54 = vadd.f32 %v281_v53, %v185_v51 }
 0x1cc   :  { %660 = vtanh.f32 %v287_v52 }
 0x1cd   :  { %662 = vtanh.f32 %v282_v54 }
 0x1d2   :  { %v657_v55 = vpop.eup %656 }
 0x1d3   :  { %v659_v56 = vpop.eup %658 }
 0x1d4   :  { %v627_v57 = vpack.c.bf16 %v657_v55, %v659_v56 }
 0x1d6   :  { %v661_v58 = vpop.eup %660  ;;  %628 = vmatprep.subr.bf16.mxu0 %v627_v57 }
 0x1d7   :  { %v663_v59 = vpop.eup %662  ;;  %630 = vmatpush3.bf16.msra.mxu0 %v627_v57 }
 0x1d8   :  { %v631_v60 = vpack.c.bf16 %v661_v58, %v663_v59 }
 0x1da   :  { %632 = vmatprep.subr.bf16.mxu0 %v631_v60 }
 0x1db   :  { %634 = vmatpush3.bf16.msra.mxu0 %v631_v60 }
 0x1de   :  { %603 = vmatmul.mubr.msk.f32.vlgmr.msra.gmra.mrb[4].mxu0 %vm192_vm2, %v534_v61 }
 0x1df   :  { %605 = vmatprep.mubr.msk.f32.mxu0 %vm192_vm2, %v535_v62 }
 0x1e2   :  { %606 = vmatmul.mubr.msk.f32.gmra.mrb[6].mxu0 %vm192_vm2, %v536_v63 }
 0x2b1   :  { %v604_v4 = vpop.f32.mrb[4].mxu0 }
 0x2b2   :  { %v408_v5 = vadd.f32 %v604_v4, %v312_v2  ;;  %v402_v6 = vpop.f32.mrb[5].mxu0 }
 0x2b3   :  { %v403_v7 = vadd.f32 %v402_v6, %v307_v3 }
 0x2b4   :  { %664 = vtanh.f32 %v408_v5 }
 0x2b5   :  { %666 = vtanh.f32 %v403_v7  ;;  %v607_v9 = vpop.f32.mrb[6].mxu0 }
 0x2b6   :  { %v418_v11 = vadd.f32 %v607_v9, %v322_v8  ;;  %v412_v12 = vpop.f32.mrb[7].mxu0 }
 0x2b7   :  { %v413_v13 = vadd.f32 %v412_v12, %v317_v10 }
 0x2b8   :  { %668 = vtanh.f32 %v418_v11 }
 0x2b9   :  { %670 = vtanh.f32 %v413_v13 }
 0x2be   :  { %v665_v14 = vpop.eup %664 }
 0x2bf   :  { %v667_v15 = vpop.eup %666 }
 0x2c0   :  { %v636_v16 = vpack.c.bf16 %v665_v14, %v667_v15 }
 0x2c2   :  { %v669_v17 = vpop.eup %668  ;;  %637 = vmatpush3.bf16.msra.mxu1 %v636_v16 }
 0x2c3   :  { %v671_v18 = vpop.eup %670  ;;  %638 = vmatprep.subr.bf16.mxu1 %v697_v0 }
 0x2c4   :  { %v639_v19 = vpack.c.bf16 %v669_v17, %v671_v18 }
 0x2c6   :  { %640 = vmatpush3.bf16.msra.mxu1 %v639_v19 }
 0x2c9   :  { %617 = vmatmul.mubr.msk.f32.vlgmr.msra.gmra.mrb[4].mxu1 %vm192_vm2, %v425_v20 }
 0x39c   :  { %v505_v26 = vpop.f32.mrb[4].mxu1 }
 0x39d   :  { %v506_v27 = vadd.f32 %v505_v26, %v435_v25  ;;  %v618_v28 = vpop.f32.mrb[5].mxu1 }
 0x39f   :  { %509 = vst [vmem:[#allocation3] sm:$0x1] %v506_v27 }
 0x3a0   :  { %683 = shalt.err (!%p680_p4)
}
 0x3a1   :  { %s684_s27 = scalar_lea.hbm %s854_s7, 16 }
 0x3a2   :  { %p685_p5 = scmp.ne.s32.totalorder %s854_s7, %s684_s27  ;;  %p688_p6 = scmp.lt.u32.totalorder %s684_s27, %s854_s7 }
 0x3a4   :  { %p690_p7 = pnand %p688_p6, %p685_p5 }
 0x3a6   :  { %693 = shalt.err (!%p690_p7)
}
 0x3a7   :  { %519 = dma.vmem_to_hbm [thread:$0]  %s517_s2, 16, %s854_s7, [#allocation4]  }
 0x3a8   :  { %694 = dma.done.wait [#allocation4], 16  }
 0x3a9   :  { %695 = vsyncadd [#allocation4], 4294967280 }
 0x3aa   :  { %523 = vsyncpa [#allocation4], 1 }

</bundles_post_ra>
